<compile_context>
chip_gen: v7x
topology: tpu7x:2x2x1
jax: 0.10.0
libtpu: 0.0.40
codegen_flags: <defaults>
</compile_context>

<pallas_src>
import jax
import jax.numpy as jnp
from jax.experimental import pallas as pl
from jax.experimental.pallas import tpu as pltpu


def _round_up(x, m):
    return ((x + m - 1) // m) * m


def ffn_reglu_kernel(x_ref, w1a_ref, w1b_ref, b1a_ref, b1b_ref, w2_ref, b2_ref,
                     o_ref, acc_ref):
    """One (row-tile, hidden-tile) grid step of the ReGLU FFN.

    Per hidden chunk h:
      a = x @ W1a[:, h] + b1a[h]       (MXU, f32 accumulate)
      b = x @ W1b[:, h] + b1b[h]
      g = relu(a) * b                   (VPU, f32)
      acc += g @ W2[h, :]               (MXU, resident f32 accumulator)
    Last h step: out = acc + b2.
    """
    h = pl.program_id(1)

    @pl.when(h == 0)
    def _init():
        acc_ref[...] = jnp.zeros_like(acc_ref)

    x = x_ref[...]
    a = jnp.dot(x, w1a_ref[...], preferred_element_type=jnp.float32) + b1a_ref[...]
    b = jnp.dot(x, w1b_ref[...], preferred_element_type=jnp.float32) + b1b_ref[...]
    g = jnp.maximum(a, 0.0) * b

    # TODO(synk): nn.Dropout(p=0.1) is identity in eval mode; training-mode
    # stochastic dropout (pltpu.prng_*) is intentionally not implemented.

    acc_ref[...] += jnp.dot(g.astype(w2_ref.dtype), w2_ref[...],
                            preferred_element_type=jnp.float32)

    @pl.when(h == pl.num_programs(1) - 1)
    def _finalize():
        o_ref[...] = (acc_ref[...] + b2_ref[...]).astype(o_ref.dtype)


def pack_ffn_params(w1, b1, w2, b2, *, compute_dtype=jnp.bfloat16,
                    hidden_tile=512):
    """One-time weight prep (slice / pad / cast), hoisted off the forward path.

    w1: [d_model, 2*d_hidden]  (columns ordered [a | b], matching torch chunk)
    b1: [2*d_hidden], w2: [d_hidden, d_model], b2: [d_model].
    """
    d_model = w1.shape[0]
    d_hidden = w1.shape[1] // 2

    # Hidden tile: lane-aligned (multiple of 128); stream d_hidden in th chunks.
    if d_hidden <= hidden_tile:
        th = _round_up(d_hidden, 128)
    else:
        th = _round_up(hidden_tile, 128)
    d_hidden_pad = _round_up(d_hidden, th)
    d_model_pad = _round_up(d_model, 128)    # lane-dense output / W2 columns

    pad_h = d_hidden_pad - d_hidden
    pad_o = d_model_pad - d_model

    # Split the ReGLU halves so each is a lane-aligned operand; zero-pad the
    # hidden dim (relu(0)*0 = 0 and padded W2 rows are zero -> numerically inert).
    w1a = jnp.pad(w1[:, :d_hidden], ((0, 0), (0, pad_h))).astype(compute_dtype)
    w1b = jnp.pad(w1[:, d_hidden:], ((0, 0), (0, pad_h))).astype(compute_dtype)
    b1a = jnp.pad(b1[:d_hidden], (0, pad_h)).reshape(1, d_hidden_pad).astype(jnp.float32)
    b1b = jnp.pad(b1[d_hidden:], (0, pad_h)).reshape(1, d_hidden_pad).astype(jnp.float32)

    w2p = jnp.pad(w2, ((0, pad_h), (0, pad_o))).astype(compute_dtype)
    b2p = jnp.pad(b2, (0, pad_o)).reshape(1, d_model_pad).astype(jnp.float32)

    return dict(
        w1a=w1a, w1b=w1b, b1a=b1a, b1b=b1b, w2=w2p, b2=b2p,
        d_model=d_model, d_hidden=d_hidden,
        d_model_pad=d_model_pad, d_hidden_pad=d_hidden_pad, th=th,
        compute_dtype=compute_dtype,
    )


def feed_forward_packed(x, params, *, tm=256):
    """x: [batch, seq, d_model] -> [batch, seq, d_model], using packed weights."""
    batch, seq, d_model = x.shape
    assert d_model == params["d_model"], "d_model mismatch with packed params"

    compute_dtype = params["compute_dtype"]
    d_model_pad = params["d_model_pad"]
    d_hidden_pad = params["d_hidden_pad"]
    th = params["th"]
    grid_h = d_hidden_pad // th

    M = batch * seq
    # Row tile: multiple of 16 (bf16 packs two rows per sublane), clamped so
    # tiny inputs don't over-pad; grid sizing via padding, no divisibility assert.
    tm = max(16, min(_round_up(tm, 16), _round_up(M, 16)))
    M_pad = _round_up(M, tm)
    grid_m = M_pad // tm

    out_dtype = x.dtype

    x2d = x.reshape(M, d_model)
    if M_pad != M:
        x2d = jnp.pad(x2d, ((0, M_pad - M), (0, 0)))
    x2d = x2d.astype(compute_dtype)

    itemsize_c = jnp.dtype(compute_dtype).itemsize
    itemsize_o = jnp.dtype(out_dtype).itemsize

    # VMEM budget: double-buffered streamed blocks + resident f32 accumulator
    # + explicit f32 intermediates (a, b, g, epilogue temp) + small headroom.
    vmem_bytes = (
        2 * tm * d_model * itemsize_c                              # x tile
        + 2 * (2 * d_model * th + th * d_model_pad) * itemsize_c   # W1a/W1b/W2 blocks
        + 2 * (2 * th + d_model_pad) * 4                           # biases
        + 2 * tm * d_model_pad * itemsize_o                        # out tile
        + tm * d_model_pad * 4                                     # f32 accumulator
        + 3 * tm * th * 4                                          # a, b, g
        + tm * d_model_pad * 4                                     # epilogue temp
        + (2 << 20)                                                # headroom
    )
    try:
        vmem_cap = int(getattr(pltpu.get_tpu_info(), "vmem_capacity_bytes",
                               64 << 20))
    except Exception:  # pragma: no cover - defensive, keep one code path
        vmem_cap = 64 << 20
    vmem_limit = int(min(max(vmem_bytes, 16 << 20), int(0.85 * vmem_cap)))

    flops = (2 * M_pad * d_model * 2 * d_hidden_pad
             + 2 * M_pad * d_hidden_pad * d_model_pad)
    bytes_accessed = (
        M_pad * d_model * itemsize_c
        + grid_m * (params["w1a"].size + params["w1b"].size
                    + params["w2"].size) * itemsize_c
        + (params["b1a"].size + params["b1b"].size + params["b2"].size) * 4
        + M_pad * d_model_pad * itemsize_o
    )

    out2d = pl.pallas_call(
        ffn_reglu_kernel,
        out_shape=jax.ShapeDtypeStruct((M_pad, d_model_pad), out_dtype),
        grid_spec=pltpu.PrefetchScalarGridSpec(
            num_scalar_prefetch=0,
            grid=(grid_m, grid_h),
            in_specs=[
                pl.BlockSpec((tm, d_model), lambda i, h: (i, 0)),        # x tile
                pl.BlockSpec((d_model, th), lambda i, h: (0, h)),        # W1a block
                pl.BlockSpec((d_model, th), lambda i, h: (0, h)),        # W1b block
                pl.BlockSpec((1, th), lambda i, h: (0, h)),              # b1a block
                pl.BlockSpec((1, th), lambda i, h: (0, h)),              # b1b block
                pl.BlockSpec((th, d_model_pad), lambda i, h: (h, 0)),    # W2 block
                pl.BlockSpec((1, d_model_pad), lambda i, h: (0, 0)),     # b2 (tiny, invariant)
            ],
            out_specs=pl.BlockSpec((tm, d_model_pad), lambda i, h: (i, 0)),
            scratch_shapes=[pltpu.VMEM((tm, d_model_pad), jnp.float32)],
        ),
        compiler_params=pltpu.CompilerParams(
            dimension_semantics=("parallel", "arbitrary"),
            vmem_limit_bytes=vmem_limit,
        ),
        cost_estimate=pl.CostEstimate(
            flops=flops, transcendentals=0, bytes_accessed=bytes_accessed),
    )(x2d, params["w1a"], params["w1b"], params["b1a"], params["b1b"],
      params["w2"], params["b2"])

    return out2d[:M, :d_model].reshape(batch, seq, d_model)


def feed_forward(x, w1, b1, w2, b2, *, tm=256, compute_dtype=jnp.bfloat16,
                 hidden_tile=512):
    """Convenience path (packs weights per call). For production, call
    pack_ffn_params() once and reuse feed_forward_packed()."""
    params = pack_ffn_params(w1, b1, w2, b2, compute_dtype=compute_dtype,
                             hidden_tile=hidden_tile)
    return feed_forward_packed(x, params, tm=tm)


def init_params(key, d_model, d_hidden):
    """Deterministic init matching nn.Linear shapes (uniform +-1/sqrt(fan_in))."""
    k1, k2, k3, k4 = jax.random.split(key, 4)
    in_d_hidden = 2 * d_hidden  # ReGLU doubles linear1's output width
    bound1 = 1.0 / (d_model ** 0.5)
    bound2 = 1.0 / (d_hidden ** 0.5)
    w1 = jax.random.uniform(k1, (d_model, in_d_hidden), jnp.float32, -bound1, bound1)
    b1 = jax.random.uniform(k2, (in_d_hidden,), jnp.float32, -bound1, bound1)
    w2 = jax.random.uniform(k3, (d_hidden, d_model), jnp.float32, -bound2, bound2)
    b2 = jax.random.uniform(k4, (d_model,), jnp.float32, -bound2, bound2)
    return w1, b1, w2, b2


def feed_forward_ref(x, w1, b1, w2, b2):
    """Pure-JAX reference (highest precision) for correctness check."""
    B, S, D = x.shape
    x2 = x.reshape(B * S, D)
    h = jnp.dot(x2, w1, precision=jax.lax.Precision.HIGHEST) + b1
    d_hidden = h.shape[-1] // 2
    a, b = h[:, :d_hidden], h[:, d_hidden:]
    g = jnp.maximum(a, 0.0) * b
    y = jnp.dot(g, w2, precision=jax.lax.Precision.HIGHEST) + b2
    return y.reshape(B, S, -1)


if __name__ == "__main__":
    key = jax.random.PRNGKey(0)
    kx1, kp1, kx2, kp2 = jax.random.split(key, 4)

    # --- Test 1: small shapes from the module spec (single grid step). ---
    batch, seq, d_model, d_hidden = 2, 8, 32, 64
    x = jax.random.normal(kx1, (batch, seq, d_model), jnp.float32)
    w1, b1, w2, b2 = init_params(kp1, d_model, d_hidden)
    y_ref = feed_forward_ref(x, w1, b1, w2, b2)

    # f32-compute path: must match the reference tightly.
    y32 = jax.block_until_ready(
        feed_forward(x, w1, b1, w2, b2, compute_dtype=jnp.float32))
    assert y32.shape == (batch, seq, d_model)
    assert jnp.allclose(y32, y_ref, atol=2e-3, rtol=2e-3), "f32 path mismatch"

    # bf16-MXU path (default): f32 accumulation, loose tolerance vs f32 ref.
    ybf = jax.block_until_ready(feed_forward(x, w1, b1, w2, b2))
    assert ybf.shape == (batch, seq, d_model)
    assert jnp.allclose(ybf, y_ref, atol=5e-2, rtol=5e-2), "bf16 path mismatch"

    # --- Test 2: exercise multi-step grid (grid_m > 1 and grid_h > 1),
    # padded token count, padded d_model, padded d_hidden, pre-packed weights.
    batch2, seq2, d_model2, d_hidden2 = 2, 40, 48, 600
    x2 = jax.random.normal(kx2, (batch2, seq2, d_model2), jnp.float32)
    w1b_, b1b_, w2b_, b2b_ = init_params(kp2, d_model2, d_hidden2)
    y2_ref = feed_forward_ref(x2, w1b_, b1b_, w2b_, b2b_)

    packed = pack_ffn_params(w1b_, b1b_, w2b_, b2b_,
                             compute_dtype=jnp.float32, hidden_tile=256)
    y2 = jax.block_until_ready(feed_forward_packed(x2, packed, tm=32))
    assert y2.shape == (batch2, seq2, d_model2)
    assert jnp.allclose(y2, y2_ref, atol=2e-3, rtol=2e-3), "tiled-grid path mismatch"

    print("KERNEL_OK")
</pallas_src>

<mosaic_0001>
module attributes {stable_mosaic.version = 11 : i64} {
  func.func @ffn_reglu_kernel(%arg0: i32, %arg1: i32, %arg2: memref<16x32xf32, #tpu.memory_space<vmem>>, %arg3: memref<32x128xf32, #tpu.memory_space<vmem>>, %arg4: memref<32x128xf32, #tpu.memory_space<vmem>>, %arg5: memref<1x128xf32, #tpu.memory_space<vmem>>, %arg6: memref<1x128xf32, #tpu.memory_space<vmem>>, %arg7: memref<128x128xf32, #tpu.memory_space<vmem>>, %arg8: memref<1x128xf32, #tpu.memory_space<vmem>>, %arg9: memref<16x128xf32, #tpu.memory_space<vmem>>, %arg10: memref<16x128xf32, #tpu.memory_space<vmem>>) attributes {dimension_semantics = [#tpu.dimension_semantics<parallel>, #tpu.dimension_semantics<arbitrary>], iteration_bounds = array<i64: 1, 1>, scalar_prefetch = 0 : i64, scratch_operands = 1 : i64, tpu.core_type = #tpu.core_type<tc>, window_params = [{transform_indices = @transform_0, window_bounds = array<i64: 16, 32>}, {transform_indices = @transform_1, window_bounds = array<i64: 32, 128>}, {transform_indices = @transform_2, window_bounds = array<i64: 32, 128>}, {transform_indices = @transform_3, window_bounds = array<i64: 1, 128>}, {transform_indices = @transform_4, window_bounds = array<i64: 1, 128>}, {transform_indices = @transform_5, window_bounds = array<i64: 128, 128>}, {pipeline_mode = #tpu.pipeline_mode<synchronous>, transform_indices = @transform_6, window_bounds = array<i64: 1, 128>}, {transform_indices = @transform_7, window_bounds = array<i64: 16, 128>}]} {
    %c0_i32 = arith.constant 0 : i32
    %0 = arith.cmpi eq, %arg1, %c0_i32 : i32
    %1 = arith.extui %0 : i1 to i32
    %c0_i32_0 = arith.constant 0 : i32
    %2 = arith.cmpi ne, %1, %c0_i32_0 : i32
    scf.if %2 {
      %cst_21 = arith.constant 0.000000e+00 : f32
      %25 = vector.broadcast %cst_21 : f32 to vector<16x128xf32>
      %c0_22 = arith.constant 0 : index
      %c0_23 = arith.constant 0 : index
      %26 = vector.load %arg10[%c0_22, %c0_23] : memref<16x128xf32, #tpu.memory_space<vmem>>, vector<16x128xf32>
      tpu.vector_store %arg10[%c0_22, %c0_23], %25 {strides = array<i32>} : memref<16x128xf32, #tpu.memory_space<vmem>>, vector<16x128xf32>,
    } else {
    }
    %c0 = arith.constant 0 : index
    %c0_1 = arith.constant 0 : index
    %3 = vector.load %arg2[%c0, %c0_1] : memref<16x32xf32, #tpu.memory_space<vmem>>, vector<16x32xf32>
    %c0_2 = arith.constant 0 : index
    %c0_3 = arith.constant 0 : index
    %4 = vector.load %arg3[%c0_2, %c0_3] : memref<32x128xf32, #tpu.memory_space<vmem>>, vector<32x128xf32>
    %cst = arith.constant dense<0.000000e+00> : vector<16x128xf32>
    %5 = tpu.matmul %3, %4, %cst {dimension_numbers = #tpu.dot_dimension_numbers<[1], [0], [0], [1], [0, 0, 1, 1], [], []>} : vector<16x32xf32>, vector<32x128xf32>, vector<16x128xf32> -> vector<16x128xf32>
    %c0_4 = arith.constant 0 : index
    %c0_5 = arith.constant 0 : index
    %6 = vector.load %arg5[%c0_4, %c0_5] : memref<1x128xf32, #tpu.memory_space<vmem>>, vector<1x128xf32>
    %7 = vector.broadcast %6 : vector<1x128xf32> to vector<16x128xf32>
    %8 = arith.addf %5, %7 : vector<16x128xf32>
    %c0_6 = arith.constant 0 : index
    %c0_7 = arith.constant 0 : index
    %9 = vector.load %arg4[%c0_6, %c0_7] : memref<32x128xf32, #tpu.memory_space<vmem>>, vector<32x128xf32>
    %cst_8 = arith.constant dense<0.000000e+00> : vector<16x128xf32>
    %10 = tpu.matmul %3, %9, %cst_8 {dimension_numbers = #tpu.dot_dimension_numbers<[1], [0], [0], [1], [0, 0, 1, 1], [], []>} : vector<16x32xf32>, vector<32x128xf32>, vector<16x128xf32> -> vector<16x128xf32>
    %c0_9 = arith.constant 0 : index
    %c0_10 = arith.constant 0 : index
    %11 = vector.load %arg6[%c0_9, %c0_10] : memref<1x128xf32, #tpu.memory_space<vmem>>, vector<1x128xf32>
    %12 = vector.broadcast %11 : vector<1x128xf32> to vector<16x128xf32>
    %13 = arith.addf %10, %12 : vector<16x128xf32>
    %cst_11 = arith.constant 0.000000e+00 : f32
    %14 = vector.broadcast %cst_11 : f32 to vector<16x128xf32>
    %15 = arith.maximumf %8, %14 : vector<16x128xf32>
    %16 = arith.mulf %15, %13 : vector<16x128xf32>
    %c0_12 = arith.constant 0 : index
    %c0_13 = arith.constant 0 : index
    %17 = vector.load %arg10[%c0_12, %c0_13] : memref<16x128xf32, #tpu.memory_space<vmem>>, vector<16x128xf32>
    %c0_14 = arith.constant 0 : index
    %c0_15 = arith.constant 0 : index
    %18 = vector.load %arg7[%c0_14, %c0_15] : memref<128x128xf32, #tpu.memory_space<vmem>>, vector<128x128xf32>
    %cst_16 = arith.constant dense<0.000000e+00> : vector<16x128xf32>
    %19 = tpu.matmul %16, %18, %cst_16 {dimension_numbers = #tpu.dot_dimension_numbers<[1], [0], [0], [1], [0, 0, 1, 1], [], []>} : vector<16x128xf32>, vector<128x128xf32>, vector<16x128xf32> -> vector<16x128xf32>
    %20 = arith.addf %17, %19 : vector<16x128xf32>
    %c0_17 = arith.constant 0 : index
    %c0_18 = arith.constant 0 : index
    %21 = vector.load %arg10[%c0_17, %c0_18] : memref<16x128xf32, #tpu.memory_space<vmem>>, vector<16x128xf32>
    tpu.vector_store %arg10[%c0_17, %c0_18], %20 {strides = array<i32>} : memref<16x128xf32, #tpu.memory_space<vmem>>, vector<16x128xf32>,
    %c0_i32_19 = arith.constant 0 : i32
    %22 = arith.cmpi eq, %arg1, %c0_i32_19 : i32
    %23 = arith.extui %22 : i1 to i32
    %c0_i32_20 = arith.constant 0 : i32
    %24 = arith.cmpi ne, %23, %c0_i32_20 : i32
    scf.if %24 {
      %c0_21 = arith.constant 0 : index
      %c0_22 = arith.constant 0 : index
      %25 = vector.load %arg10[%c0_21, %c0_22] : memref<16x128xf32, #tpu.memory_space<vmem>>, vector<16x128xf32>
      %c0_23 = arith.constant 0 : index
      %c0_24 = arith.constant 0 : index
      %26 = vector.load %arg8[%c0_23, %c0_24] : memref<1x128xf32, #tpu.memory_space<vmem>>, vector<1x128xf32>
      %27 = vector.broadcast %26 : vector<1x128xf32> to vector<16x128xf32>
      %28 = arith.addf %25, %27 : vector<16x128xf32>
      %c0_25 = arith.constant 0 : index
      %c0_26 = arith.constant 0 : index
      %29 = vector.load %arg9[%c0_25, %c0_26] : memref<16x128xf32, #tpu.memory_space<vmem>>, vector<16x128xf32>
      tpu.vector_store %arg9[%c0_25, %c0_26], %28 {strides = array<i32>} : memref<16x128xf32, #tpu.memory_space<vmem>>, vector<16x128xf32>,
    } else {
    }
    return
  }
  func.func @transform_0(%arg0: i32, %arg1: i32) -> (i32, i32) {
    %c0_i32 = arith.constant 0 : i32
    %c0_i32_0 = arith.constant 0 : i32
    return %arg0, %c0_i32 : i32, i32
  }
  func.func @transform_1(%arg0: i32, %arg1: i32) -> (i32, i32) {
    %c0_i32 = arith.constant 0 : i32
    %c0_i32_0 = arith.constant 0 : i32
    return %c0_i32, %arg1 : i32, i32
  }
  func.func @transform_2(%arg0: i32, %arg1: i32) -> (i32, i32) {
    %c0_i32 = arith.constant 0 : i32
    %c0_i32_0 = arith.constant 0 : i32
    return %c0_i32, %arg1 : i32, i32
  }
  func.func @transform_3(%arg0: i32, %arg1: i32) -> (i32, i32) {
    %c0_i32 = arith.constant 0 : i32
    %c0_i32_0 = arith.constant 0 : i32
    return %c0_i32, %arg1 : i32, i32
  }
  func.func @transform_4(%arg0: i32, %arg1: i32) -> (i32, i32) {
    %c0_i32 = arith.constant 0 : i32
    %c0_i32_0 = arith.constant 0 : i32
    return %c0_i32, %arg1 : i32, i32
  }
  func.func @transform_5(%arg0: i32, %arg1: i32) -> (i32, i32) {
    %c0_i32 = arith.constant 0 : i32
    %c0_i32_0 = arith.constant 0 : i32
    return %arg1, %c0_i32 : i32, i32
  }
  func.func @transform_6(%arg0: i32, %arg1: i32) -> (i32, i32) {
    %c0_i32 = arith.constant 0 : i32
    %c0_i32_0 = arith.constant 0 : i32
    %c0_i32_1 = arith.constant 0 : i32
    return %c0_i32, %c0_i32_0 : i32, i32
  }
  func.func @transform_7(%arg0: i32, %arg1: i32) -> (i32, i32) {
    %c0_i32 = arith.constant 0 : i32
    %c0_i32_0 = arith.constant 0 : i32
    return %arg0, %c0_i32 : i32, i32
  }
}

</mosaic_0001>

<bundles_post_ra>
// kernel: tpu_custom_call.1
= control target key start
LH: loop header
LB: loop body
LE: loop exit
PB: predicated region body
PF: predicated region fallthrough
CT: control target
= control target key end

     0   :  { %12 = vsyncpa [#allocation4], 0  ;;  %s821_s0 = inlined_call_operand.hbm [shape: f32[16,32], index: 0, kind: input, shape index: {}]   ;;  %s822_s1 = inlined_call_operand.hbm [shape: f32[32,128], index: 1, kind: input, shape index: {}]   ;;  %s823_s2 = inlined_call_operand.hbm [shape: f32[32,128], index: 2, kind: input, shape index: {}]   ;;  %s824_s3 = inlined_call_operand.vmem [shape: f32[1,128], index: 3, kind: input, shape index: {}]   ;;  %s825_s4 = inlined_call_operand.vmem [shape: f32[1,128], index: 4, kind: input, shape index: {}]   ;;  %s826_s5 = inlined_call_operand.hbm [shape: f32[128,128], index: 5, kind: input, shape index: {}]   ;;  %s827_s6 = inlined_call_operand.vmem [shape: f32[1,128], index: 6, kind: input, shape index: {}]   ;;  %s828_s7 = inlined_call_operand.hbm [shape: f32[16,128], index: 7, kind: output, shape index: {}]  }
   0x1   :  { %13 = vsyncpa [#allocation7], 0 }
   0x2   :  { %14 = vsyncpa [#allocation10], 0 }
   0x3   :  { %15 = vsyncpa [#allocation5], 0  ;;  %s672_s24 = smov [#allocation6]   ;;  %s673_s26 = smov [#allocation3]  }
   0x4   :  { %s33_s25 = sshll.u32 %s672_s24, 4  ;;  %s21_s27 = sshll.u32 %s673_s26, 4  ;;  %s34_s25 = int_to_ptr.vmem [resolvable:$true] %s33_s25  ;;  %s719_s27 = int_to_ptr.vmem [resolvable:$true] %s21_s27 }
   0x5   :  { %s554_s30 = scalar_lea.hbm %s822_s1, 512 }
   0x6   :  { %p555_p0 = scmp.ne.s32.totalorder %s822_s1, %s554_s30  ;;  %p558_p1 = scmp.lt.u32.totalorder %s554_s30, %s822_s1 }
   0x8   :  { %p560_p2 = pnand %p558_p1, %p555_p0 }
   0xa   :  { %563 = shalt.err (!%p560_p2)
}
   0xb   :  { %s564_s12 = scalar_lea.vmem %s34_s25, 512  ;;  %p569_p4 = scmp.lt.s32.totalorder %s34_s25, %s34_s25 }
   0xc   :  { %p565_p3 = scmp.ne.s32.totalorder %s34_s25, %s564_s12  ;;  %p570_p5 = scmp.lt.s32.totalorder %s564_s12, %s564_s12 }
   0xe   :  { %p571_p6 = por %p570_p5, %p569_p4 }
  0x10   :  { %p572_p7 = pnand %p571_p6, %p565_p3 }
  0x12   :  { %575 = shalt.err (!%p572_p7)
}
  0x13   :  { %s674_s13 = smov 128   ;;  %s675_s14 = smov 8  }
  0x14   :  { %39 = dma.hbm_to_vmem [thread:$0]  %s822_s1, 512, %s34_s25, [#allocation7], %s674_s13, %s674_s13, %s675_s14  }
  0x15   :  { %s576_s19 = scalar_lea.hbm %s821_s0, 256 }
  0x16   :  { %p577_p8 = scmp.ne.s32.totalorder %s821_s0, %s576_s19  ;;  %p580_p9 = scmp.lt.u32.totalorder %s576_s19, %s821_s0 }
  0x18   :  { %p582_p10 = pnand %p580_p9, %p577_p8 }
  0x1a   :  { %585 = shalt.err (!%p582_p10)
}
  0x1b   :  { %s586_s24 = scalar_lea.vmem %s719_s27, 256  ;;  %p591_p12 = scmp.lt.s32.totalorder %s719_s27, %s719_s27 }
  0x1c   :  { %p587_p11 = scmp.ne.s32.totalorder %s719_s27, %s586_s24  ;;  %p592_p13 = scmp.lt.s32.totalorder %s586_s24, %s586_s24 }
  0x1e   :  { %p593_p0 = por %p592_p13, %p591_p12 }
  0x20   :  { %p594_p1 = pnand %p593_p0, %p587_p11 }
  0x22   :  { %597 = shalt.err (!%p594_p1)
}
  0x23   :  { %27 = dma.hbm_to_vmem [thread:$0]  %s821_s0, 256, %s719_s27, [#allocation4], %s674_s13, %s674_s13, %s675_s14  }
  0x24   :  { %s676_s26 = smov [#allocation8]   ;;  %s677_s29 = smov [#allocation9]  }
  0x25   :  { %s45_s28 = sshll.u32 %s676_s26, 4  ;;  %s61_s30 = sshll.u32 %s677_s29, 4  ;;  %s46_s28 = int_to_ptr.vmem [resolvable:$true] %s45_s28  ;;  %s756_s30 = int_to_ptr.vmem [resolvable:$true] %s61_s30 }
  0x26   :  { %s598_s10 = scalar_lea.hbm %s823_s2, 512 }
  0x27   :  { %p599_p2 = scmp.ne.s32.totalorder %s823_s2, %s598_s10  ;;  %p602_p3 = scmp.lt.u32.totalorder %s598_s10, %s823_s2 }
  0x29   :  { %p604_p4 = pnand %p602_p3, %p599_p2 }
  0x2b   :  { %607 = shalt.err (!%p604_p4)
}
  0x2c   :  { %s608_s0 = scalar_lea.vmem %s46_s28, 512  ;;  %p613_p6 = scmp.lt.s32.totalorder %s46_s28, %s46_s28 }
  0x2d   :  { %p609_p5 = scmp.ne.s32.totalorder %s46_s28, %s608_s0  ;;  %p614_p7 = scmp.lt.s32.totalorder %s608_s0, %s608_s0 }
  0x2f   :  { %p615_p8 = por %p614_p7, %p613_p6 }
  0x31   :  { %p616_p9 = pnand %p615_p8, %p609_p5 }
  0x33   :  { %619 = shalt.err (!%p616_p9)
}
  0x34   :  { %51 = dma.hbm_to_vmem [thread:$0]  %s823_s2, 512, %s46_s28, [#allocation7], %s674_s13, %s674_s13, %s675_s14  }
  0x35   :  { %s620_s20 = scalar_lea.hbm %s826_s5, 2048 }
  0x36   :  { %p621_p10 = scmp.ne.s32.totalorder %s826_s5, %s620_s20  ;;  %p624_p11 = scmp.lt.u32.totalorder %s620_s20, %s826_s5 }
  0x38   :  { %p626_p12 = pnand %p624_p11, %p621_p10 }
  0x3a   :  { %629 = shalt.err (!%p626_p12)
}
  0x3b   :  { %s630_s1 = scalar_lea.vmem %s756_s30, 2048  ;;  %p635_p0 = scmp.lt.s32.totalorder %s756_s30, %s756_s30 }
  0x3c   :  { %p631_p13 = scmp.ne.s32.totalorder %s756_s30, %s630_s1  ;;  %p636_p1 = scmp.lt.s32.totalorder %s630_s1, %s630_s1 }
  0x3e   :  { %p637_p2 = por %p636_p1, %p635_p0 }
  0x40   :  { %p638_p3 = pnand %p637_p2, %p631_p13 }
  0x42   :  { %641 = shalt.err (!%p638_p3)
}
  0x43   :  { %67 = dma.hbm_to_vmem [thread:$0]  %s826_s5, 2048, %s756_s30, [#allocation10], %s674_s13, %s674_s13, %s675_s14  }
  0x44   :  { %664 = dma.done.wait [#allocation4], 256  }
  0x45   :  { %665 = vsyncadd [#allocation4], 4294967040 }
  0x46   :  { %666 = dma.done.wait [#allocation7], 1024  }
  0x47   :  { %667 = vsyncadd [#allocation7], 4294966272 }
  0x48   :  { %668 = dma.done.wait [#allocation10], 2048  }
  0x49   :  { %669 = vsyncadd [#allocation10], 4294965248  ;;  %vm101_vm0 = vcmask 261120   ;;  %v90_v0 = vld [vmem:[#allocation6] sm:$0xff]  ;;  %v91_v1 = vld [vmem:[#allocation6 + $0x8] sm:$0xff] }
  0x4a   :  { %v92_v2 = vld [vmem:[#allocation6 + $0x10] sm:$0xff]  ;;  %v499_v3 = vpack.c.bf16 %v91_v1, %v90_v0  ;;  %v93_v4 = vld [vmem:[#allocation6 + $0x18] sm:$0xff]  ;;  %v183_v7 = vld [vmem:[#allocation8] sm:$0xff] }
  0x4b   :  { %v88_v5 = vld [vmem:[#allocation3] sm:$0xff]  ;;  %v503_v6 = vpack.c.bf16 %v93_v4, %v92_v2  ;;  %v184_v8 = vld [vmem:[#allocation8 + $0x8] sm:$0xff]  ;;  %v275_v9 = vld [vmem:[#allocation9] sm:$0xff] }
  0x4c   :  { %450 = vmatprep.mubr.msk.f32.mxu1 %vm101_vm0, %v88_v5  ;;  %500 = vmatprep.subr.bf16.mxu1 %v499_v3  ;;  %v276_v10 = vld [vmem:[#allocation9 + $0x8] sm:$0xff]  ;;  %v277_v12 = vld [vmem:[#allocation9 + $0x10] sm:$0xff]  ;;  %v278_v13 = vld [vmem:[#allocation9 + $0x18] sm:$0xff]  ;;  %v507_v14 = vpack.c.bf16 %v184_v8, %v183_v7 }
  0x4d   :  { %502 = vmatpush3.bf16.msra.mxu1 %v499_v3  ;;  %v515_v11 = vpack.c.bf16 %v276_v10, %v275_v9  ;;  %v185_v15 = vld [vmem:[#allocation8 + $0x10] sm:$0xff]  ;;  %v519_v16 = vpack.c.bf16 %v278_v13, %v277_v12  ;;  %v186_v17 = vld [vmem:[#allocation8 + $0x18] sm:$0xff]  ;;  %v279_v18 = vld [vmem:[#allocation9 + $0x20] sm:$0xff] }
  0x4e   :  { %504 = vmatprep.subr.bf16.mxu1 %v503_v6  ;;  %v280_v19 = vld [vmem:[#allocation9 + $0x28] sm:$0xff]  ;;  %v89_v20 = vld [vmem:[#allocation3 + $0x8] sm:$0xff]  ;;  %v511_v21 = vpack.c.bf16 %v186_v17, %v185_v15  ;;  %v281_v23 = vld [vmem:[#allocation9 + $0x30] sm:$0xff] }
  0x4f   :  { %516 = vmatprep.subr.bf16.mxu0 %v515_v11  ;;  %v523_v22 = vpack.c.bf16 %v280_v19, %v279_v18  ;;  %v282_v24 = vld [vmem:[#allocation9 + $0x38] sm:$0xff]  ;;  %v283_v26 = vld [vmem:[#allocation9 + $0x40] sm:$0xff]  ;;  %v284_v27 = vld [vmem:[#allocation9 + $0x48] sm:$0xff] }
  0x50   :  { %518 = vmatpush3.bf16.msra.mxu0 %v515_v11  ;;  %v527_v25 = vpack.c.bf16 %v282_v24, %v281_v23  ;;  %v531_v28 = vpack.c.bf16 %v284_v27, %v283_v26  ;;  %v285_v29 = vld [vmem:[#allocation9 + $0x50] sm:$0xff]  ;;  %v286_v30 = vld [vmem:[#allocation9 + $0x58] sm:$0xff]  ;;  %v287_v32 = vld [vmem:[#allocation9 + $0x60] sm:$0xff] }
  0x51   :  { %506 = vmatpush3.bf16.msra.mxu1 %v503_v6  ;;  %520 = vmatprep.subr.bf16.mxu0 %v519_v16  ;;  %v535_v31 = vpack.c.bf16 %v286_v30, %v285_v29  ;;  %v288_v33 = vld [vmem:[#allocation9 + $0x68] sm:$0xff]  ;;  %v289_v35 = vld [vmem:[#allocation9 + $0x70] sm:$0xff]  ;;  %v290_v36 = vld [vmem:[#allocation9 + $0x78] sm:$0xff] }
  0x52   :  { %508 = vmatprep.subr.bf16.mxu1 %v507_v14  ;;  %v539_v34 = vpack.c.bf16 %v288_v33, %v287_v32  ;;  %v543_v37 = vpack.c.bf16 %v290_v36, %v289_v35  ;;  %v405_v40 = vld [vmem:[%s824_s3] ss:$0 sm:$0xff]  ;;  %s678_s3 = smov [#allocation11]  }
  0x53   :  { %v408_v43 = vld [vmem:[%s825_s4] ss:$0 sm:$0xff]  ;;  %s391_s9 = sshll.u32 %s678_s3, 4  ;;  %s392_s9 = int_to_ptr.vmem [resolvable:$true] %s391_s9 }
  0x54   :  { %451 = vmatmul.mubr.msk.f32.vlgmr.msra.gmra.mrb[0].mxu1 %vm101_vm0, %v89_v20  ;;  %522 = vmatpush3.bf16.msra.mxu0 %v519_v16  ;;  %v411_v52 = vld [vmem:[%s827_s6] ss:$0 sm:$0xff]  ;;  %s642_s4 = scalar_lea.vmem %s392_s9, 256  ;;  %p647_p5 = scmp.lt.s32.totalorder %s392_s9, %s392_s9 }
  0x55   :  { %510 = vmatpush3.bf16.msra.mxu1 %v507_v14  ;;  %461 = vmatprep.mubr.msk.f32.mxu1 %vm101_vm0, %v88_v5  ;;  %p643_p4 = scmp.ne.s32.totalorder %s392_s9, %s642_s4  ;;  %p648_p6 = scmp.lt.s32.totalorder %s642_s4, %s642_s4 }
  0x56   :  { %512 = vmatprep.subr.bf16.mxu1 %v511_v21  ;;  %524 = vmatprep.subr.bf16.mxu0 %v523_v22 }
  0x57   :  { %p649_p7 = por %p648_p6, %p647_p5 }
  0x58   :  { %526 = vmatpush3.bf16.msra.mxu0 %v523_v22 }
  0x59   :  { %514 = vmatpush3.bf16.msra.mxu1 %v511_v21  ;;  %528 = vmatprep.subr.bf16.mxu0 %v527_v25  ;;  %p650_p8 = pnand %p649_p7, %p643_p4 }
  0x5c   :  { %462 = vmatmul.mubr.msk.f32.vlgmr.msra.gmra.mrb[2].mxu1 %vm101_vm0, %v89_v20  ;;  %530 = vmatpush3.bf16.msra.mxu0 %v527_v25 }
  0x5d   :  { %532 = vmatprep.subr.bf16.mxu0 %v531_v28 }
  0x60   :  { %534 = vmatpush3.bf16.msra.mxu0 %v531_v28 }
  0x61   :  { %536 = vmatprep.subr.bf16.mxu0 %v535_v31 }
  0x64   :  { %538 = vmatpush3.bf16.msra.mxu0 %v535_v31 }
  0x65   :  { %540 = vmatprep.subr.bf16.mxu0 %v539_v34 }
  0x68   :  { %542 = vmatpush3.bf16.msra.mxu0 %v539_v34 }
  0x69   :  { %544 = vmatprep.subr.bf16.mxu0 %v543_v37 }
  0x6c   :  { %546 = vmatpush3.bf16.msra.mxu0 %v543_v37 }
 0x127   :  { %v452_v38 = vpop.f32.mrb[0].mxu1 }
 0x128   :  { %v174_v39 = vpop.f32.mrb[1].mxu1  ;;  %v180_v41 = vadd.f32 %v452_v38, %v405_v40 }
 0x129   :  { %v175_v42 = vadd.f32 %v405_v40, %v174_v39 }
 0x12a   :  { %v270_v45 = vmax.f32 %v180_v41, 0.0 }
 0x12b   :  { %v269_v48 = vmax.f32 %v175_v42, 0.0 }
 0x12f   :  { %v463_v44 = vpop.f32.mrb[2].mxu1 }
 0x130   :  { %v266_v46 = vadd.f32 %v463_v44, %v408_v43  ;;  %v260_v47 = vpop.f32.mrb[3].mxu1 }
 0x131   :  { %v261_v49 = vadd.f32 %v408_v43, %v260_v47 }
 0x132   :  { %v272_v50 = vmul.f32 %v270_v45, %v266_v46 }
 0x133   :  { %v271_v51 = vmul.f32 %v269_v48, %v261_v49 }
 0x135   :  { %496 = vmatprep.mubr.f32.mxu0 %v271_v51 }
 0x136   :  { %497 = vmatmul.mubr.f32.vlgmr.msra.gmra.mrb[0].mxu0 %v272_v50 }
 0x209   :  { %v498_v53 = vpop.f32.mrb[0].mxu0 }
 0x20a   :  { %v383_v54 = vadd.f32 %v498_v53, %v411_v52  ;;  %v357_v55 = vpop.f32.mrb[1].mxu0 }
 0x20b   :  { %v382_v56 = vadd.f32 %v411_v52, %v357_v55 }
 0x20c   :  { %385 = vst [vmem:[#allocation11 + $0x8] sm:$0xff] %v383_v54 }
 0x20d   :  { %384 = vst [vmem:[#allocation11] sm:$0xff] %v382_v56 }
 0x20e   :  { %653 = shalt.err (!%p650_p8)
}
 0x20f   :  { %s654_s6 = scalar_lea.hbm %s828_s7, 256 }
 0x210   :  { %p655_p9 = scmp.ne.s32.totalorder %s828_s7, %s654_s6  ;;  %p658_p10 = scmp.lt.u32.totalorder %s654_s6, %s828_s7 }
 0x212   :  { %p660_p11 = pnand %p658_p10, %p655_p9 }
 0x214   :  { %663 = shalt.err (!%p660_p11)
}
 0x215   :  { %397 = dma.vmem_to_hbm [thread:$0]  %s392_s9, 256, %s828_s7, [#allocation5], %s674_s13, %s674_s13, %s675_s14  }
 0x216   :  { %670 = dma.done.wait [#allocation5], 256  }
 0x217   :  { %671 = vsyncadd [#allocation5], 4294967040 }
 0x218   :  { %401 = vsyncpa [#allocation4], 1 }
 0x219   :  { %402 = vsyncpa [#allocation7], 1 }
 0x21a   :  { %403 = vsyncpa [#allocation10], 1 }
 0x21b   :  { %404 = vsyncpa [#allocation5], 1 }

</bundles_post_ra>
